<compile_context>
chip_gen: v6e
topology: v6e:2x2x1
jax: 0.10.0
libtpu: 0.0.40
codegen_flags: <defaults>
</compile_context>

<pallas_src>
import functools

import jax
import jax.numpy as jnp
from jax.experimental import pallas as pl
from jax.experimental.pallas import tpu as pltpu


def _rotary_phase_kernel(inv_freq_ref, pos_ref, cos_ref, sin_ref, *,
                         phase, dup_store):
    # inv_freq_ref: (1, W)   f32   (W = dim//2 if dup_store else dim)
    # pos_ref:      (TS, 1)  int32 -> cast to f32 in-kernel
    # cos_ref/sin_ref: (TS, dim)   output dtype
    inv = inv_freq_ref[...]                        # (1, W)
    pos = pos_ref[...].astype(jnp.float32)         # (TS, 1)
    ang = pos * inv + phase                        # (TS, W) lane-broadcast mul
    cos_v = jnp.cos(ang).astype(cos_ref.dtype)     # cast BEFORE duplication
    sin_v = jnp.sin(ang).astype(sin_ref.dtype)
    if dup_store:
        # half-width compute + two lane-aligned (128-multiple) sub-stores
        half = inv.shape[-1]
        cos_ref[:, :half] = cos_v
        cos_ref[:, half:] = cos_v
        sin_ref[:, :half] = sin_v
        sin_ref[:, half:] = sin_v
    else:
        # full-width angle (inv_freq pre-duplicated in the wrapper)
        cos_ref[...] = cos_v
        sin_ref[...] = sin_v


def gemma_rotary_embedding_phase(x, position_ids, dim,
                                 base=10000.0, phase=0.3926990817):
    """Pallas implementation of GemmaRotaryEmbeddingPhase.forward.

    Returns (cos, sin), each of shape (B, S, dim), dtype == x.dtype.
    """
    B, S = position_ids.shape
    half = dim // 2
    out_dtype = x.dtype
    N = B * S

    # Buffer setup (same formula as the module __init__); plain JAX glue.
    inv_freq = 1.0 / (base ** (jnp.arange(0, dim, 2, dtype=jnp.float32) / dim))

    # Choose duplication strategy based on lane alignment of the half width.
    dup_store = (half % 128 == 0)
    if dup_store:
        inv_row = inv_freq.reshape(1, half)                       # (1, half)
    else:
        inv_row = jnp.concatenate([inv_freq, inv_freq], 0).reshape(1, dim)

    # Flatten (B, S) -> N rows; positions on the sublane axis, 1 lane wide.
    pos_flat = position_ids.reshape(N, 1)

    # Row tile: as large as practical (writeback-bound kernel); multiple of 8
    # unless it covers the whole row axis.  Partial last block is fine.
    MAX_TILE = 2048
    TS = N if N <= MAX_TILE else MAX_TILE
    grid = (pl.cdiv(N, TS),)

    kernel = functools.partial(_rotary_phase_kernel,
                               phase=float(phase), dup_store=dup_store)

    itemsize = jnp.dtype(out_dtype).itemsize
    W = inv_row.shape[-1]
    # Double-buffered block footprint: 2 outputs + pos + inv_freq.
    block_bytes = 2 * (2 * TS * dim * itemsize) \
        + 2 * TS * pos_flat.dtype.itemsize + 2 * W * 4
    vmem_limit = int(min(64 * 1024 * 1024,
                         max(2 * block_bytes + (1 << 20), 16 * 1024 * 1024)))

    out_bytes = 2 * N * dim * itemsize
    in_bytes = N * pos_flat.dtype.itemsize + W * 4
    cost = pl.CostEstimate(
        flops=2 * N * W,                 # mul + phase add
        transcendentals=2 * N * W,       # cos + sin
        bytes_accessed=out_bytes + in_bytes,
    )

    cos_flat, sin_flat = pl.pallas_call(
        kernel,
        grid=grid,
        out_shape=(
            jax.ShapeDtypeStruct((N, dim), out_dtype),
            jax.ShapeDtypeStruct((N, dim), out_dtype),
        ),
        in_specs=[
            pl.BlockSpec((1, W), lambda i: (0, 0)),
            pl.BlockSpec((TS, 1), lambda i: (i, 0)),
        ],
        out_specs=(
            pl.BlockSpec((TS, dim), lambda i: (i, 0)),
            pl.BlockSpec((TS, dim), lambda i: (i, 0)),
        ),
        compiler_params=pltpu.CompilerParams(
            dimension_semantics=("parallel",),
            vmem_limit_bytes=vmem_limit,
        ),
        cost_estimate=cost,
    )(inv_row, pos_flat)

    return cos_flat.reshape(B, S, dim), sin_flat.reshape(B, S, dim)


def _reference(x, position_ids, dim, base=10000.0, phase=0.3926990817):
    # Pure-JAX reference mirroring the PyTorch math exactly.
    inv_freq = 1.0 / (base ** (jnp.arange(0, dim, 2, dtype=jnp.float32) / dim))
    B, S = position_ids.shape
    inv_exp = jnp.broadcast_to(inv_freq[None, :, None], (B, dim // 2, 1))
    pos_exp = position_ids[:, None, :].astype(jnp.float32)
    freqs = jnp.matmul(inv_exp, pos_exp).transpose(0, 2, 1)          # (B, S, dim//2)
    emb = jnp.concatenate([freqs, freqs], axis=-1) + phase           # (B, S, dim)
    return jnp.cos(emb).astype(x.dtype), jnp.sin(emb).astype(x.dtype)


if __name__ == "__main__":
    key = jax.random.PRNGKey(0)
    B, S, hidden = 2, 8, 32
    dim = 32  # rotary dim (head_dim)

    kx, _ = jax.random.split(key)
    x = jax.random.normal(kx, (B, S, hidden), dtype=jnp.float32)
    position_ids = jnp.broadcast_to(jnp.arange(S, dtype=jnp.int32)[None, :], (B, S))

    cos, sin = gemma_rotary_embedding_phase(x, position_ids, dim)
    cos = jax.block_until_ready(cos)
    sin = jax.block_until_ready(sin)

    cos_ref, sin_ref = _reference(x, position_ids, dim)
    assert cos.shape == (B, S, dim) and sin.shape == (B, S, dim)
    assert cos.dtype == x.dtype and sin.dtype == x.dtype
    assert jnp.allclose(cos, cos_ref, atol=1e-5, rtol=1e-5)
    assert jnp.allclose(sin, sin_ref, atol=1e-5, rtol=1e-5)

    # Exercise the lane-aligned dup-store path (half % 128 == 0) and an
    # awkward, non-divisible flattened row count with bf16 outputs.
    B2, S2, dim2 = 3, 1000, 256
    x2 = jax.random.normal(kx, (B2, S2, 8), dtype=jnp.bfloat16)
    pos2 = jnp.broadcast_to(jnp.arange(S2, dtype=jnp.int32)[None, :], (B2, S2))
    cos2, sin2 = gemma_rotary_embedding_phase(x2, pos2, dim2)
    cos2 = jax.block_until_ready(cos2)
    sin2 = jax.block_until_ready(sin2)
    cos2_ref, sin2_ref = _reference(x2, pos2, dim2)
    assert jnp.allclose(cos2.astype(jnp.float32), cos2_ref.astype(jnp.float32),
                        atol=2e-2, rtol=2e-2)
    assert jnp.allclose(sin2.astype(jnp.float32), sin2_ref.astype(jnp.float32),
                        atol=2e-2, rtol=2e-2)

    print("KERNEL_OK")
</pallas_src>

<mosaic_0001>
module attributes {stable_mosaic.version = 11 : i64} {
  func.func @_rotary_phase_kernel(%arg0: i32, %arg1: memref<1x32xf32, #tpu.memory_space<vmem>>, %arg2: memref<16x1xi32, #tpu.memory_space<vmem>>, %arg3: memref<16x32xf32, #tpu.memory_space<vmem>>, %arg4: memref<16x32xf32, #tpu.memory_space<vmem>>) attributes {dimension_semantics = [#tpu.dimension_semantics<parallel>], iteration_bounds = array<i64: 1>, scalar_prefetch = 0 : i64, scratch_operands = 0 : i64, tpu.core_type = #tpu.core_type<tc>, window_params = [{pipeline_mode = #tpu.pipeline_mode<synchronous>, transform_indices = @transform_0, window_bounds = array<i64: 1, 32>}, {transform_indices = @transform_1, window_bounds = array<i64: 16, 1>}, {transform_indices = @transform_2, window_bounds = array<i64: 16, 32>}, {transform_indices = @transform_3, window_bounds = array<i64: 16, 32>}]} {
    %c0 = arith.constant 0 : index
    %c0_0 = arith.constant 0 : index
    %0 = vector.load %arg1[%c0, %c0_0] : memref<1x32xf32, #tpu.memory_space<vmem>>, vector<1x32xf32>
    %c0_1 = arith.constant 0 : index
    %c0_2 = arith.constant 0 : index
    %1 = vector.load %arg2[%c0_1, %c0_2] : memref<16x1xi32, #tpu.memory_space<vmem>>, vector<16x1xi32>
    %2 = arith.sitofp %1 : vector<16x1xi32> to vector<16x1xf32>
    %3 = vector.broadcast %2 : vector<16x1xf32> to vector<16x32xf32>
    %4 = vector.broadcast %0 : vector<1x32xf32> to vector<16x32xf32>
    %5 = arith.mulf %3, %4 : vector<16x32xf32>
    %cst = arith.constant 0.392699093 : f32
    %6 = vector.broadcast %cst : f32 to vector<16x32xf32>
    %7 = arith.addf %5, %6 : vector<16x32xf32>
    %8 = math.cos %7 : vector<16x32xf32>
    %9 = math.sin %7 : vector<16x32xf32>
    %c0_3 = arith.constant 0 : index
    %c0_4 = arith.constant 0 : index
    %10 = vector.load %arg3[%c0_3, %c0_4] : memref<16x32xf32, #tpu.memory_space<vmem>>, vector<16x32xf32>
    tpu.vector_store %arg3[%c0_3, %c0_4], %8 {strides = array<i32>} : memref<16x32xf32, #tpu.memory_space<vmem>>, vector<16x32xf32>,
    %c0_5 = arith.constant 0 : index
    %c0_6 = arith.constant 0 : index
    %11 = vector.load %arg4[%c0_5, %c0_6] : memref<16x32xf32, #tpu.memory_space<vmem>>, vector<16x32xf32>
    tpu.vector_store %arg4[%c0_5, %c0_6], %9 {strides = array<i32>} : memref<16x32xf32, #tpu.memory_space<vmem>>, vector<16x32xf32>,
    return
  }
  func.func @transform_0(%arg0: i32) -> (i32, i32) {
    %c0_i32 = arith.constant 0 : i32
    %c0_i32_0 = arith.constant 0 : i32
    %c0_i32_1 = arith.constant 0 : i32
    return %c0_i32, %c0_i32_0 : i32, i32
  }
  func.func @transform_1(%arg0: i32) -> (i32, i32) {
    %c0_i32 = arith.constant 0 : i32
    %c0_i32_0 = arith.constant 0 : i32
    return %arg0, %c0_i32 : i32, i32
  }
  func.func @transform_2(%arg0: i32) -> (i32, i32) {
    %c0_i32 = arith.constant 0 : i32
    %c0_i32_0 = arith.constant 0 : i32
    return %arg0, %c0_i32 : i32, i32
  }
  func.func @transform_3(%arg0: i32) -> (i32, i32) {
    %c0_i32 = arith.constant 0 : i32
    %c0_i32_0 = arith.constant 0 : i32
    return %arg0, %c0_i32 : i32, i32
  }
}

</mosaic_0001>

<bundles_post_ra>
// kernel: tpu_custom_call.1
= control target key start
LH: loop header
LB: loop body
LE: loop exit
PB: predicated region body
PF: predicated region fallthrough
CT: control target
= control target key end

     0   :  { %9 = vsyncpa [#allocation3], 0  ;;  %v580_v2 = vmov 0   ;;  %s690_s0 = inlined_call_operand.vmem [shape: f32[1,32], index: 0, kind: input, shape index: {}]   ;;  %s691_s1 = inlined_call_operand.vmem [shape: s32[16,1], index: 1, kind: input, shape index: {}]   ;;  %s692_s2 = inlined_call_operand.hbm [shape: f32[16,32], index: 2, kind: output, shape index: {0}]   ;;  %s693_s3 = inlined_call_operand.hbm [shape: f32[16,32], index: 3, kind: output, shape index: {1}]  }
   0x1   :  { %v16_v0 = vld [vmem:[%s691_s1] sm:$0xff]  ;;  %v17_v1 = vld [vmem:[%s691_s1 + $0x8] sm:$0xff]  ;;  %527 = vset.pattern.permute.xlu0 %v580_v2 }
   0x2   :  { %v18_v3 = vcvt.s32.f32 %v16_v0  ;;  %v19_v4 = vcvt.s32.f32 %v17_v1 }
   0x4   :  { %22 = vperm.xlu0 %527, %v18_v3  }
   0x5   :  { %10 = vsyncpa [#allocation5], 0  ;;  %v491_v5 = vld [vmem:[%s690_s0] ss:$0 sm:$0xff]  ;;  %v581_v28 = vmov 683565275  }
   0x6   :  { %v582_v32 = vmov 2475754826   ;;  %v583_v34 = vmov 2131351028   ;;  %v584_v36 = vmov 2102212464  }
   0x7   :  { %v585_v38 = vmov 920167782   ;;  %v586_v45 = vmov 1326507024   ;;  %s587_s0 = smov [#allocation2]   ;;  %s588_s18 = smov [#allocation4]  }
   0x8   :  { %27 = vperm.xlu0 %527, %v19_v4   ;;  %s464_s1 = sshll.u32 %s587_s0, 4  ;;  %s476_s19 = sshll.u32 %s588_s18, 4  ;;  %s465_s1 = int_to_ptr.vmem [resolvable:$true] %s464_s1  ;;  %s477_s19 = int_to_ptr.vmem [resolvable:$true] %s476_s19 }
   0x9   :  { %s536_s20 = scalar_lea.vmem %s465_s1, 256  ;;  %p541_p1 = scmp.lt.s32.totalorder %s465_s1, %s465_s1 }
   0xa   :  { %p537_p0 = scmp.ne.s32.totalorder %s465_s1, %s536_s20  ;;  %p542_p2 = scmp.lt.s32.totalorder %s536_s20, %s536_s20 }
   0xc   :  { %p543_p3 = por %p542_p2, %p541_p1 }
   0xe   :  { %p544_p4 = pnand %p543_p3, %p537_p0 }
  0x7f   :  { %v23_v6 = vpop.permute.xlu0 %22 }
  0x80   :  { %v36_v7 = vmul.f32 %v491_v5, %v23_v6 }
  0x82   :  { %v620_v8 = vadd.f32 0.3926991, %v36_v7 }
  0x83   :  { %v28_v9 = vpop.permute.xlu0 %27 }
  0x84   :  { %v40_v10 = vand.u32 2147483647, %v620_v8  ;;  %v43_v11 = vand.u32 2139095040, %v620_v8  ;;  %v37_v12 = vmul.f32 %v491_v5, %v28_v9  ;;  %vm42_vm14 = vcmp.lt.s32.totalorder %v620_v8, 0 }
  0x86   :  { %v44_v13 = vshrl.u32 %v43_v11, 23  ;;  %v47_v14 = vand.u32 8388607, %v40_v10  ;;  %v626_v15 = vadd.f32 0.3926991, %v37_v12 }
  0x87   :  { %vm41_vm15 = vcmp.le.f32.partialorder %v40_v10, 0.7853982 }
  0x88   :  { %v492_v16 = vadd.s32 4294967169, %v44_v13  ;;  %v146_v17 = vand.u32 2139095040, %v626_v15  ;;  %v48_v19 = vor.u32 8388608, %v47_v14  ;;  %v143_v21 = vand.u32 2147483647, %v626_v15 }
  0x8a   :  { %v50_v18 = vadd.s32 1, %v492_v16  ;;  %v147_v20 = vshrl.u32 %v146_v17, 23  ;;  %v630_v26 = vshll.u32 %v48_v19, 8  ;;  %v150_v30 = vand.u32 8388607, %v143_v21 }
  0x8c   :  { %vm51_vm0 = vcmp.gt.s32.totalorder %v50_v18, 0  ;;  %v496_v23 = vadd.s32 4294967169, %v147_v20  ;;  %v151_v60 = vor.u32 8388608, %v150_v30 }
  0x8d   :  { %v52_v22 = vsel %vm51_vm0, %v50_v18, 0  ;;  %vm145_vm0 = vcmp.lt.s32.totalorder %v626_v15, 0 }
  0x8e   :  { %v53_v24 = vshrl.u32 %v52_v22, 5  ;;  %v54_v25 = vand.u32 31, %v52_v22  ;;  %v153_v31 = vadd.s32 1, %v496_v23  ;;  %v191_v11 = vshll.u32 %v151_v60, 8 }
  0x90   :  { %v55_v27 = vsub.s32 32, %v54_v25  ;;  %v57_v29 = vshll.u32 %v581_v28, %v54_v25  ;;  %v60_v33 = vshll.u32 %v582_v32, %v54_v25  ;;  %v63_v35 = vshll.u32 %v583_v34, %v54_v25 }
  0x91   :  { %v66_v37 = vshll.u32 %v584_v36, %v54_v25  ;;  %v69_v39 = vshll.u32 %v585_v38, %v54_v25  ;;  %vm72_vm1 = vcmp.lt.s32.totalorder %v53_v24, 1  ;;  %vm74_vm2 = vcmp.lt.s32.totalorder %v53_v24, 3 }
  0x92   :  { %v58_v40 = vshrl.u32 %v582_v32, %v55_v27  ;;  %v61_v41 = vshrl.u32 %v583_v34, %v55_v27  ;;  %v64_v42 = vshrl.u32 %v584_v36, %v55_v27  ;;  %v56_v43 = vshrl.u32 %v581_v28, %v55_v27 }
  0x93   :  { %v67_v44 = vshrl.u32 %v585_v38, %v55_v27  ;;  %v70_v46 = vshrl.u32 %v586_v45, %v55_v27  ;;  %vm154_vm3 = vcmp.gt.s32.totalorder %v153_v31, 0  ;;  %vm75_vm4 = vcmp.lt.s32.totalorder %v53_v24, 4 }
  0x94   :  { %v59_v47 = vor.u32 %v58_v40, %v57_v29  ;;  %v62_v48 = vor.u32 %v61_v41, %v60_v33  ;;  %v65_v49 = vor.u32 %v64_v42, %v63_v35  ;;  %v155_v52 = vsel %vm154_vm3, %v153_v31, 0 }
  0x95   :  { %v68_v50 = vor.u32 %v67_v44, %v66_v37  ;;  %v71_v51 = vor.u32 %v70_v46, %v69_v39  ;;  %vm73_vm5 = vcmp.lt.s32.totalorder %v53_v24, 2  ;;  %v157_v63 = vand.u32 31, %v155_v52 }
  0x96   :  { %v76_v53 = vsel %vm72_vm1, %v56_v43, %v59_v47  ;;  %v77_v54 = vsel %vm75_vm4, %v65_v49, 2102212464  ;;  %v80_v55 = vsel %vm72_vm1, %v59_v47, %v62_v48  ;;  %v84_v56 = vsel %vm72_vm1, %v62_v48, %v65_v49 }
  0x97   :  { %v78_v57 = vsel %vm74_vm2, %v62_v48, %v77_v54  ;;  %v81_v58 = vsel %vm75_vm4, %v68_v50, 920167782  ;;  %v85_v59 = vsel %vm75_vm4, %v71_v51, 1326507024  ;;  %v156_v7 = vshrl.u32 %v155_v52, 5 }
  0x98   :  { %v82_v61 = vsel %vm74_vm2, %v65_v49, %v81_v58  ;;  %v86_v62 = vsel %vm74_vm2, %v68_v50, %v85_v59  ;;  %v79_v0 = vsel %vm73_vm5, %v76_v53, %v78_v57  ;;  %v158_v9 = vsub.s32 32, %v157_v63 }
  0x99   :  { %v83_v1 = vsel %vm73_vm5, %v80_v55, %v82_v61  ;;  %v87_v2 = vsel %vm73_vm5, %v84_v56, %v86_v62  ;;  %v95_v12 = vmul.u32 %v630_v26, %v79_v0  ;;  %v160_v13 = vshll.u32 %v581_v28, %v157_v63 }
  0x9a   :  { %v643_v3 = vmul.u32.u64.low %v630_v26, %v87_v2  ;;  %v644_v4 = vmul.u32.u64.high %v630_v26, %v87_v2, %v643_v3  ;;  %v647_v5 = vmul.u32.u64.low %v630_v26, %v83_v1  ;;  %v648_v6 = vmul.u32.u64.high %v630_v26, %v83_v1, %v647_v5 }
  0x9b   :  { %v163_v14 = vshll.u32 %v582_v32, %v157_v63  ;;  %v166_v16 = vshll.u32 %v583_v34, %v157_v63  ;;  %v161_v17 = vshrl.u32 %v582_v32, %v158_v9  ;;  %v164_v18 = vshrl.u32 %v583_v34, %v158_v9 }
  0x9c   :  { %v167_v19 = vshrl.u32 %v584_v36, %v158_v9  ;;  %v169_v20 = vshll.u32 %v584_v36, %v157_v63  ;;  %vm97_vm6 = vc.u32 %v644_v4, %v647_v5  ;;  %v98_v22 = vadd.s32 1, %v648_v6 }
  0x9d   :  { %v170_v23 = vshrl.u32 %v585_v38, %v158_v9  ;;  %v172_v24 = vshll.u32 %v585_v38, %v157_v63  ;;  %v162_v25 = vor.u32 %v161_v17, %v160_v13  ;;  %v165_v27 = vor.u32 %v164_v18, %v163_v14 }
  0x9e   :  { %v168_v29 = vor.u32 %v167_v19, %v166_v16  ;;  %v173_v30 = vshrl.u32 %v586_v45, %v158_v9  ;;  %v99_v26 = vsel %vm97_vm6, %v98_v22, %v648_v6  ;;  %vm175_vm7 = vcmp.lt.s32.totalorder %v156_v7, 1 }
  0x9f   :  { %v171_v31 = vor.u32 %v170_v23, %v169_v20  ;;  %vm178_vm8 = vcmp.lt.s32.totalorder %v156_v7, 4  ;;  %v100_v32 = vadd.s32 %v99_v26, %v95_v12  ;;  %vm177_vm9 = vcmp.lt.s32.totalorder %v156_v7, 3 }
  0xa0   :  { %v174_v33 = vor.u32 %v173_v30, %v172_v24  ;;  %v180_v34 = vsel %vm178_vm8, %v168_v29, 2102212464  ;;  %v159_v35 = vshrl.u32 %v581_v28, %v158_v9  ;;  %v183_v36 = vsel %vm175_vm7, %v162_v25, %v165_v27 }
  0xa1   :  { %v184_v37 = vsel %vm178_vm8, %v171_v31, 920167782  ;;  %v187_v39 = vsel %vm175_vm7, %v165_v27, %v168_v29  ;;  %v101_v40 = vadd.s32 536870912, %v100_v32  ;;  %vm176_vm10 = vcmp.lt.s32.totalorder %v156_v7, 2 }
  0xa2   :  { %v185_v38 = vsel %vm177_vm9, %v168_v29, %v184_v37  ;;  %v188_v41 = vsel %vm178_vm8, %v174_v33, 1326507024  ;;  %v179_v42 = vsel %vm175_vm7, %v159_v35, %v162_v25  ;;  %v181_v43 = vsel %vm177_vm9, %v165_v27, %v180_v34 }
  0xa3   :  { %v186_v44 = vsel %vm176_vm10, %v183_v36, %v185_v38  ;;  %v189_v45 = vsel %vm177_vm9, %v171_v31, %v188_v41  ;;  %v102_v46 = vshrl.u32 %v101_v40, 30  ;;  %v182_v52 = vsel %vm176_vm10, %v179_v42, %v181_v43 }
  0xa4   :  { %v190_v47 = vsel %vm176_vm10, %v187_v39, %v189_v45  ;;  %v658_v48 = vmul.u32.u64.low %v191_v11, %v186_v44  ;;  %v659_v49 = vmul.u32.u64.high %v191_v11, %v186_v44, %v658_v48  ;;  %v198_v55 = vmul.u32 %v191_v11, %v182_v52 }
  0xa5   :  { %v661_v50 = vmul.u32.u64.low %v191_v11, %v190_v47  ;;  %v662_v51 = vmul.u32.u64.high %v191_v11, %v190_v47, %v661_v50  ;;  %v103_v28 = vshll.u32 %v102_v46, 30  ;;  %v96_v3 = vadd.s32 %v647_v5, %v644_v4 }
  0xa6   :  { %v201_v54 = vadd.s32 1, %v659_v49  ;;  %v126_v30 = vsub.s32 4, %v102_v46  ;;  %vm144_vm1 = vcmp.le.f32.partialorder %v143_v21, 0.7853982  ;;  %vm454_vm2 = vcmask 261120  }
  0xa7   :  { %v104_v53 = vsub.s32 %v100_v32, %v103_v28  ;;  %vm200_vm11 = vc.u32 %v662_v51, %v658_v48  ;;  %v199_v27 = vadd.s32 %v658_v48, %v662_v51  ;;  %vm132_vm9 = vweird.f32 %v620_v8 }
  0xa8   :  { %v202_v57 = vsel %vm200_vm11, %v201_v54, %v659_v49  ;;  %v127_v37 = vsel %vm42_vm14, %v126_v30, %v102_v46 }
  0xa9   :  { %v106_v56 = vsub.s32 0, %v104_v53  ;;  %v203_v58 = vadd.s32 %v202_v57, %v198_v55  ;;  %v129_v41 = vsel %vm41_vm15, 0, %v127_v37 }
  0xaa   :  { %v339_v44 = vadd.s32 3, %v129_v41  ;;  %v133_v48 = vand.u32 3, %v129_v41 }
  0xab   :  { %v493_v59 = vmin.u32 %v106_v56, %v104_v53  ;;  %v204_v60 = vadd.s32 536870912, %v203_v58 }
  0xac   :  { %v340_v46 = vand.u32 3, %v339_v44  ;;  %vm138_vm3 = vcmp.eq.s32.totalorder %v133_v48, 2  ;;  %vm135_vm5 = vcmp.eq.s32.totalorder %v133_v48, 0  ;;  %vm134_vm7 = vcmp.lt.s32.totalorder %v133_v48, 2 }
  0xad   :  { %v108_v61 = vclz %v493_v59  ;;  %v205_v62 = vshrl.u32 %v204_v60, 30 }
  0xae   :  { %vm345_vm4 = vcmp.eq.s32.totalorder %v340_v46, 2  ;;  %vm342_vm6 = vcmp.eq.s32.totalorder %v340_v46, 0  ;;  %vm341_vm8 = vcmp.lt.s32.totalorder %v340_v46, 2 }
  0xaf   :  { %v494_v63 = vadd.s32 4294967294, %v108_v61  ;;  %v206_v0 = vshll.u32 %v205_v62, 30  ;;  %v229_v45 = vsub.s32 4, %v205_v62 }
  0xb1   :  { %vm495_vm12 = vcmp.lt.s32.totalorder %v494_v63, 0  ;;  %v207_v2 = vsub.s32 %v203_v58, %v206_v0  ;;  %v230_v49 = vsel %vm145_vm0, %v229_v45, %v205_v62 }
  0xb2   :  { %v111_v1 = vsel %vm495_vm12, 0, %v494_v63 }
  0xb3   :  { %v112_v6 = vsub.s32 32, %v111_v1  ;;  %v116_v7 = vsub.s32 4294967266, %v111_v1  ;;  %v209_v9 = vsub.s32 0, %v207_v2  ;;  %v113_v11 = vshll.u32 %v104_v53, %v111_v1 }
  0xb4   :  { %v232_v53 = vsel %vm144_vm1, 0, %v230_v49 }
  0xb5   :  { %v114_v12 = vshrl.u32 %v96_v3, %v112_v6  ;;  %v117_v13 = vadd.s32 127, %v116_v7  ;;  %v497_v14 = vmin.u32 %v209_v9, %v207_v2  ;;  %v443_v59 = vadd.s32 3, %v232_v53 }
  0xb6   :  { %v236_v62 = vand.u32 3, %v232_v53 }
  0xb7   :  { %v115_v16 = vor.u32 %v114_v12, %v113_v11  ;;  %v118_v17 = vshll.u32 %v117_v13, 23  ;;  %v211_v18 = vclz %v497_v14  ;;  %v444_v63 = vand.u32 3, %v443_v59 }
  0xb8   :  { %vm241_vm10 = vcmp.eq.s32.totalorder %v236_v62, 2  ;;  %vm238_vm12 = vcmp.eq.s32.totalorder %v236_v62, 0 }
  0xb9   :  { %v119_v19 = vor.u32 4788187, %v118_v17  ;;  %v498_v20 = vadd.s32 4294967294, %v211_v18  ;;  %v122_v23 = vcvt.s32.f32 %v115_v16  ;;  %vm449_vm11 = vcmp.eq.s32.totalorder %v444_v63, 2 }
  0xbb   :  { %v120_v22 = vand.u32 2147483647, %v119_v19  ;;  %vm499_vm13 = vcmp.lt.s32.totalorder %v498_v20, 0 }
  0xbc   :  { %v214_v25 = vsel %vm499_vm13, 0, %v498_v20  ;;  %vm446_vm13 = vcmp.eq.s32.totalorder %v444_v63, 0 }
  0xbd   :  { %v123_v24 = vmul.f32 %v122_v23, %v120_v22  ;;  %v215_v4 = vsub.s32 32, %v214_v25  ;;  %v219_v5 = vsub.s32 4294967266, %v214_v25  ;;  %v216_v26 = vshll.u32 %v207_v2, %v214_v25 }
  0xbf   :  { %v124_v29 = vxor.u32 2147483648, %v123_v24  ;;  %v217_v31 = vshrl.u32 %v199_v27, %v215_v4  ;;  %v220_v32 = vadd.s32 127, %v219_v5 }
  0xc1   :  { %v125_v33 = vsel %vm42_vm14, %v124_v29, %v123_v24  ;;  %v218_v35 = vor.u32 %v217_v31, %v216_v26  ;;  %v221_v36 = vshll.u32 %v220_v32, 23  ;;  %vm237_vm14 = vcmp.lt.s32.totalorder %v236_v62, 2 }
  0xc2   :  { %v128_v34 = vsel %vm41_vm15, %v620_v8, %v125_v33  ;;  %vm445_vm15 = vcmp.lt.s32.totalorder %v444_v63, 2 }
  0xc3   :  { %528 = vcosq.f32 %v128_v34  ;;  %v222_v39 = vor.u32 4788187, %v221_v36  ;;  %v225_v38 = vcvt.s32.f32 %v218_v35 }
  0xc4   :  { %530 = vsinq.f32 %v128_v34 }
  0xc5   :  { %v223_v40 = vand.u32 2147483647, %v222_v39 }
  0xc7   :  { %v226_v42 = vmul.f32 %v225_v38, %v223_v40 }
  0xc9   :  { %v227_v43 = vxor.u32 2147483648, %v226_v42 }
  0xcb   :  { %v228_v10 = vsel %vm145_vm0, %v227_v43, %v226_v42  ;;  %vm235_vm0 = vweird.f32 %v626_v15 }
  0xcc   :  { %v231_v47 = vsel %vm144_vm1, %v626_v15, %v228_v10 }
  0xcd   :  { %532 = vcosq.f32 %v231_v47 }
  0xce   :  { %534 = vsinq.f32 %v231_v47 }
  0xd0   :  { %v529_v50 = vpop.eup %528 }
  0xd1   :  { %v531_v51 = vpop.eup %530  ;;  %v139_v28 = vxor.u32 2147483648, %v529_v50 }
  0xd2   :  { %v136_v52 = vxor.u32 2147483648, %v531_v51 }
  0xd3   :  { %v140_v54 = vsel %vm138_vm3, %v139_v28, %v531_v51  ;;  %v347_v21 = vsel %vm345_vm4, %v139_v28, %v531_v51 }
  0xd4   :  { %v137_v55 = vsel %vm135_vm5, %v529_v50, %v136_v52  ;;  %v344_v56 = vsel %vm342_vm6, %v529_v50, %v136_v52 }
  0xd5   :  { %v141_v57 = vsel %vm134_vm7, %v137_v55, %v140_v54  ;;  %v348_v58 = vsel %vm341_vm8, %v344_v56, %v347_v21 }
  0xd6   :  { %v142_v60 = vsel %vm132_vm9, nan, %v141_v57  ;;  %v349_v61 = vsel %vm132_vm9, nan, %v348_v58 }
  0xd7   :  { %455 = vst.msk [vmem:[#allocation2] sm:$0xff] %vm454_vm2, %v142_v60  ;;  %457 = vst.msk [vmem:[#allocation4] sm:$0xff] %vm454_vm2, %v349_v61 }
  0xda   :  { %v533_v0 = vpop.eup %532 }
  0xdb   :  { %v535_v1 = vpop.eup %534  ;;  %v242_v2 = vxor.u32 2147483648, %v533_v0 }
  0xdc   :  { %v239_v3 = vxor.u32 2147483648, %v535_v1 }
  0xdd   :  { %v243_v8 = vsel %vm241_vm10, %v242_v2, %v535_v1  ;;  %v451_v6 = vsel %vm449_vm11, %v242_v2, %v535_v1 }
  0xde   :  { %v240_v7 = vsel %vm238_vm12, %v533_v0, %v239_v3  ;;  %v448_v9 = vsel %vm446_vm13, %v533_v0, %v239_v3 }
  0xdf   :  { %v244_v11 = vsel %vm237_vm14, %v240_v7, %v243_v8  ;;  %v452_v12 = vsel %vm445_vm15, %v448_v9, %v451_v6 }
  0xe0   :  { %v245_v13 = vsel %vm235_vm0, nan, %v244_v11  ;;  %v453_v14 = vsel %vm235_vm0, nan, %v452_v12 }
  0xe1   :  { %456 = vst.msk [vmem:[#allocation2 + $0x8] sm:$0xff] %vm454_vm2, %v245_v13  ;;  %458 = vst.msk [vmem:[#allocation4 + $0x8] sm:$0xff] %vm454_vm2, %v453_v14 }
  0xe2   :  { %547 = shalt.err (!%p544_p4)
}
  0xe3   :  { %s589_s21 = smov 128   ;;  %s590_s22 = smov 8  }
  0xe4   :  { %470 = dma.vmem_to_hbm [thread:$0]  %s465_s1, 256, %s692_s2, [#allocation3], %s589_s21, %s589_s21, %s590_s22  }
  0xe5   :  { %s556_s25 = scalar_lea.vmem %s477_s19, 256  ;;  %p561_p6 = scmp.lt.s32.totalorder %s477_s19, %s477_s19 }
  0xe6   :  { %p557_p5 = scmp.ne.s32.totalorder %s477_s19, %s556_s25  ;;  %p562_p7 = scmp.lt.s32.totalorder %s556_s25, %s556_s25 }
  0xe8   :  { %p563_p8 = por %p562_p7, %p561_p6 }
  0xea   :  { %p564_p9 = pnand %p563_p8, %p557_p5 }
  0xec   :  { %567 = shalt.err (!%p564_p9)
}
  0xed   :  { %482 = dma.vmem_to_hbm [thread:$0]  %s477_s19, 256, %s693_s3, [#allocation5], %s589_s21, %s589_s21, %s590_s22  }
  0xee   :  { %576 = dma.done.wait [#allocation3], 256  }
  0xef   :  { %577 = vsyncadd [#allocation3], 4294967040 }
  0xf0   :  { %578 = dma.done.wait [#allocation5], 256  }
  0xf1   :  { %579 = vsyncadd [#allocation5], 4294967040 }
  0xf2   :  { %489 = vsyncpa [#allocation3], 1 }
  0xf3   :  { %490 = vsyncpa [#allocation5], 1 }

</bundles_post_ra>
